<compile_context>
chip_gen: v5e
topology: v5e:2x2
jax: 0.10.0
libtpu: 0.0.40
codegen_flags: <defaults>
</compile_context>

<pallas_src>
import functools

import jax
import jax.numpy as jnp
from jax.experimental import pallas as pl
from jax.experimental.pallas import tpu as pltpu

_LANES = 128


def _pooling_kernel(x_ref, o_ref, *, inv_k: float):
    # x_ref: (TB, 128, K) tile in VMEM;  o_ref: (TB, 128) lane-dense tile.
    x = x_ref[...]
    if x.dtype != jnp.float32:          # only upcast sub-32-bit inputs
        x = x.astype(jnp.float32)
    row_max = jnp.max(x, axis=-1)       # (TB, 128)
    row_sum = jnp.sum(x, axis=-1)       # (TB, 128)  (mean fused as sum * 1/K)
    o_ref[...] = (row_max + row_sum * inv_k).astype(o_ref.dtype)


def _choose_block_groups(rb_needed: int, K: int, itemsize: int,
                         vmem_budget_bytes: int) -> int:
    """Pick TB (number of 128-row groups per grid step) from a VMEM budget."""
    # The K (lane) axis pads up to a multiple of 128 in VMEM.
    lane_k = ((K + _LANES - 1) // _LANES) * _LANES
    # Double-buffered input tile + double-buffered output tile, per TB unit.
    per_tb = 2 * _LANES * (lane_k + 1) * itemsize
    tb = max(8, int(vmem_budget_bytes // per_tb) // 8 * 8)
    # Keep at least ~4 grid steps when there is enough work (pipelining and
    # megacore sharding on multi-TensorCore chips).
    if rb_needed >= 32:
        per_step = ((-(-rb_needed // 4)) + 7) // 8 * 8
        tb = min(tb, per_step)
    tb = min(tb, max(1, rb_needed))
    if rb_needed > tb:
        tb = max(8, tb // 8 * 8)   # multi-tile: TB must be a multiple of 8
    return tb


def pooling(knn_x_w: jax.Array, *,
            vmem_budget_bytes: int = 16 * 1024 * 1024) -> jax.Array:
    """knn_x_w: (..., K) -> (...,) = max(-1) + mean(-1)."""
    *lead, K = knn_x_w.shape
    R = 1
    for d in lead:
        R *= d

    x2d = knn_x_w.reshape(R, K)
    itemsize = jnp.dtype(knn_x_w.dtype).itemsize
    rb_needed = -(-R // _LANES)                     # 128-row groups needed
    tb = _choose_block_groups(rb_needed, K, itemsize, vmem_budget_bytes)
    num_tiles = -(-rb_needed // tb)
    rp = num_tiles * tb * _LANES                    # padded row count

    if rp != R:
        x2d = jnp.pad(x2d, ((0, rp - R), (0, 0)))   # padded rows are discarded
    x3 = x2d.reshape(num_tiles * tb, _LANES, K)     # free row-major reshape

    kernel = functools.partial(_pooling_kernel, inv_k=1.0 / K)
    out = pl.pallas_call(
        kernel,
        out_shape=jax.ShapeDtypeStruct((num_tiles * tb, _LANES), knn_x_w.dtype),
        grid_spec=pltpu.PrefetchScalarGridSpec(
            num_scalar_prefetch=0,
            grid=(num_tiles,),
            in_specs=[pl.BlockSpec((tb, _LANES, K), lambda i: (i, 0, 0))],
            out_specs=pl.BlockSpec((tb, _LANES), lambda i: (i, 0)),
        ),
        compiler_params=pltpu.CompilerParams(
            dimension_semantics=("parallel",),
            vmem_limit_bytes=32 * 1024 * 1024,
        ),
    )(x3)

    return out.reshape(rp)[:R].reshape(tuple(lead))


def pooling_ref(knn_x_w: jax.Array) -> jax.Array:
    return jnp.max(knn_x_w, axis=-1) + jnp.mean(knn_x_w, axis=-1)


if __name__ == "__main__":
    key = jax.random.PRNGKey(0)
    key_small, key_big = jax.random.split(key)

    # (B, C, G, K): batch=2, channels=4, groups=16, neighbors=16
    knn_x_w = jax.random.normal(key_small, (2, 4, 16, 16), dtype=jnp.float32)
    out = jax.block_until_ready(pooling(knn_x_w))
    ref = pooling_ref(knn_x_w)
    assert out.shape == (2, 4, 16), out.shape
    assert jnp.allclose(out, ref, atol=1e-5, rtol=1e-5), \
        float(jnp.max(jnp.abs(out - ref)))

    # Second check: exercises row padding, multi-tile grid and odd K.
    big = jax.random.normal(key_big, (2, 3, 850, 24), dtype=jnp.float32)
    out2 = jax.block_until_ready(pooling(big))
    ref2 = pooling_ref(big)
    assert out2.shape == (2, 3, 850), out2.shape
    assert jnp.allclose(out2, ref2, atol=1e-5, rtol=1e-5), \
        float(jnp.max(jnp.abs(out2 - ref2)))

    print("KERNEL_OK")
</pallas_src>

<mosaic_0001>
module attributes {stable_mosaic.version = 11 : i64} {
  func.func @_pooling_kernel(%arg0: i32, %arg1: memref<1x128x16xf32, #tpu.memory_space<vmem>>, %arg2: memref<1x128xf32, #tpu.memory_space<vmem>>) attributes {dimension_semantics = [#tpu.dimension_semantics<parallel>], iteration_bounds = array<i64: 1>, scalar_prefetch = 0 : i64, scratch_operands = 0 : i64, tpu.core_type = #tpu.core_type<tc>, window_params = [{transform_indices = @transform_0, window_bounds = array<i64: 1, 128, 16>}, {transform_indices = @transform_1, window_bounds = array<i64: 1, 128>}]} {
    %c0 = arith.constant 0 : index
    %c0_0 = arith.constant 0 : index
    %c0_1 = arith.constant 0 : index
    %0 = vector.load %arg1[%c0, %c0_0, %c0_1] : memref<1x128x16xf32, #tpu.memory_space<vmem>>, vector<1x128x16xf32>
    %cst = arith.constant dense<0xFF800000> : vector<1x128xf32>
    %1 = vector.multi_reduction <maximumf>, %0, %cst [2] : vector<1x128x16xf32> to vector<1x128xf32>
    %cst_2 = arith.constant dense<0.000000e+00> : vector<1x128xf32>
    %2 = vector.multi_reduction <add>, %0, %cst_2 [2] : vector<1x128x16xf32> to vector<1x128xf32>
    %cst_3 = arith.constant 6.250000e-02 : f32
    %3 = vector.broadcast %cst_3 : f32 to vector<1x128xf32>
    %4 = arith.mulf %2, %3 : vector<1x128xf32>
    %5 = arith.addf %1, %4 : vector<1x128xf32>
    %c0_4 = arith.constant 0 : index
    %c0_5 = arith.constant 0 : index
    %6 = vector.load %arg2[%c0_4, %c0_5] : memref<1x128xf32, #tpu.memory_space<vmem>>, vector<1x128xf32>
    tpu.vector_store %arg2[%c0_4, %c0_5], %5 {strides = array<i32>} : memref<1x128xf32, #tpu.memory_space<vmem>>, vector<1x128xf32>,
    return
  }
  func.func @transform_0(%arg0: i32) -> (i32, i32, i32) {
    %c0_i32 = arith.constant 0 : i32
    %c0_i32_0 = arith.constant 0 : i32
    %c0_i32_1 = arith.constant 0 : i32
    return %arg0, %c0_i32, %c0_i32_0 : i32, i32, i32
  }
  func.func @transform_1(%arg0: i32) -> (i32, i32) {
    %c0_i32 = arith.constant 0 : i32
    %c0_i32_0 = arith.constant 0 : i32
    return %arg0, %c0_i32 : i32, i32
  }
}

</mosaic_0001>

<bundles_post_ra>
// kernel: tpu_custom_call.1
= control target key start
LH: loop header
LB: loop body
LE: loop exit
PB: predicated region body
PF: predicated region fallthrough
CT: control target
= control target key end

     0   :  { %vm25_vm0 = vcmask 130048   ;;  %s402_s0 = inlined_call_operand.vmem [shape: f32[1,128,16], index: 0, kind: input, shape index: {}]   ;;  %s403_s1 = inlined_call_operand.hbm [shape: f32[1,128], index: 1, kind: output, shape index: {}]  }
   0x1   :  { %v13_v0 = vld [vmem:[%s402_s0 + $0x20] sm:$0xff]  ;;  %v11_v1 = vld [vmem:[%s402_s0 + $0x10] sm:$0xff]  ;;  %v14_v6 = vld [vmem:[%s402_s0 + $0x28] sm:$0xff] }
   0x2   :  { %v9_v2 = vld [vmem:[%s402_s0] sm:$0xff]  ;;  %v38_v3 = vsel %vm25_vm0, %v13_v0, -inf  ;;  %v32_v4 = vsel %vm25_vm0, %v11_v1, -inf  ;;  %v12_v7 = vld [vmem:[%s402_s0 + $0x18] sm:$0xff] }
   0x3   :  { %v26_v5 = vsel %vm25_vm0, %v9_v2, -inf  ;;  %39 = vmax.xlane.f32.xlu2 %v38_v3  ;;  %33 = vmax.xlane.f32.xlu1 %v32_v4 }
   0x4   :  { %27 = vmax.xlane.f32.xlu0 %v26_v5 }
   0x5   :  { %6 = vsyncpa [#allocation3], 0  ;;  %v10_v8 = vld [vmem:[%s402_s0 + $0x8] sm:$0xff]  ;;  %v41_v9 = vsel %vm25_vm0, %v14_v6, -inf  ;;  %v35_v10 = vsel %vm25_vm0, %v12_v7, -inf  ;;  %v17_v12 = vld [vmem:[%s402_s0 + $0x40] sm:$0xff]  ;;  %v170_v60 = vlaneseq }
   0x6   :  { %v29_v11 = vsel %vm25_vm0, %v10_v8, -inf  ;;  %v16_v13 = vld [vmem:[%s402_s0 + $0x38] sm:$0xff]  ;;  %v15_v14 = vld [vmem:[%s402_s0 + $0x30] sm:$0xff]  ;;  %v50_v15 = vsel %vm25_vm0, %v17_v12, -inf  ;;  %v18_v20 = vld [vmem:[%s402_s0 + $0x48] sm:$0xff]  ;;  %v80_v24 = vsel %vm25_vm0, %v11_v1, 0.0 }
   0x7   :  { %v47_v16 = vsel %vm25_vm0, %v16_v13, -inf  ;;  %v44_v17 = vsel %vm25_vm0, %v15_v14, -inf  ;;  %v20_v18 = vld [vmem:[%s402_s0 + $0x58] sm:$0xff]  ;;  %v19_v19 = vld [vmem:[%s402_s0 + $0x50] sm:$0xff]  ;;  %v53_v23 = vsel %vm25_vm0, %v18_v20, -inf  ;;  %v77_v25 = vsel %vm25_vm0, %v10_v8, 0.0 }
   0x8   :  { %v59_v21 = vsel %vm25_vm0, %v20_v18, -inf  ;;  %v56_v22 = vsel %vm25_vm0, %v19_v19, -inf  ;;  %v74_v26 = vsel %vm25_vm0, %v9_v2, 0.0  ;;  %v89_v27 = vsel %vm25_vm0, %v14_v6, 0.0  ;;  %v22_v36 = vld [vmem:[%s402_s0 + $0x68] sm:$0xff]  ;;  %v21_v37 = vld [vmem:[%s402_s0 + $0x60] sm:$0xff] }
   0x9   :  { %v86_v28 = vsel %vm25_vm0, %v13_v0, 0.0  ;;  %v83_v29 = vsel %vm25_vm0, %v12_v7, 0.0  ;;  %v98_v30 = vsel %vm25_vm0, %v17_v12, 0.0  ;;  %v95_v31 = vsel %vm25_vm0, %v16_v13, 0.0  ;;  %v24_v41 = vld [vmem:[%s402_s0 + $0x78] sm:$0xff]  ;;  %v23_v42 = vld [vmem:[%s402_s0 + $0x70] sm:$0xff] }
   0xa   :  { %v92_v32 = vsel %vm25_vm0, %v15_v14, 0.0  ;;  %v107_v33 = vsel %vm25_vm0, %v20_v18, 0.0  ;;  %v104_v34 = vsel %vm25_vm0, %v19_v19, 0.0  ;;  %v101_v35 = vsel %vm25_vm0, %v18_v20, 0.0  ;;  %s278_s0 = smov [#allocation2]   ;;  %s242_s12 = sshll.u32 %s403_s1, 4  ;;  %s243_s12 = int_to_ptr.hbm [resolvable:$true] %s242_s12 }
   0xb   :  { %42 = vmax.xlane.f32.xlu2 %v41_v9  ;;  %36 = vmax.xlane.f32.xlu1 %v35_v10  ;;  %v113_v38 = vsel %vm25_vm0, %v22_v36, 0.0  ;;  %v62_v39 = vsel %vm25_vm0, %v21_v37, -inf  ;;  %v110_v40 = vsel %vm25_vm0, %v21_v37, 0.0  ;;  %v65_v43 = vsel %vm25_vm0, %v22_v36, -inf  ;;  %s240_s9 = sshll.u32 %s278_s0, 4  ;;  %s241_s9 = int_to_ptr.vmem [resolvable:$true] %s240_s9 }
   0xc   :  { %30 = vmax.xlane.f32.xlu0 %v29_v11  ;;  %v119_v44 = vsel %vm25_vm0, %v24_v41, 0.0  ;;  %v116_v45 = vsel %vm25_vm0, %v23_v42, 0.0  ;;  %v71_v46 = vsel %vm25_vm0, %v24_v41, -inf  ;;  %v68_v47 = vsel %vm25_vm0, %v23_v42, -inf }
   0xd   :  { %v377_v61 = vand.u32 127, %v170_v60  ;;  %vm175_vm1 = vcmask 130112   ;;  %vm179_vm2 = vcmask 195712   ;;  %vm183_vm3 = vcmask 261312  }
   0xe   :  { %vm187_vm4 = vcmask 326912   ;;  %vm191_vm5 = vcmask 392512   ;;  %vm195_vm6 = vcmask 458112   ;;  %vm199_vm7 = vcmask 523712  }
   0xf   :  { %v177_v0 = vadd.s32 4294967280, %v377_v61  ;;  %v173_v2 = vadd.s32 4294967288, %v377_v61  ;;  %v189_v36 = vadd.s32 4294967256, %v377_v61  ;;  %vm203_vm8 = vcmask 589312  }
  0x10   :  { %vm207_vm9 = vcmask 654912   ;;  %vm211_vm10 = vcmask 720512   ;;  %vm215_vm11 = vcmask 786112   ;;  %vm219_vm12 = vcmask 851712  }
  0x11   :  { %vm223_vm13 = vcmask 917312   ;;  %vm227_vm14 = vcmask 982912   ;;  %vm231_vm15 = vcmask 1048512  }
  0x13   :  { %51 = vmax.xlane.f32.xlu2 %v50_v15  ;;  %48 = vmax.xlane.f32.xlu1 %v47_v16 }
  0x14   :  { %45 = vmax.xlane.f32.xlu0 %v44_v17 }
  0x1b   :  { %60 = vmax.xlane.f32.xlu2 %v59_v21  ;;  %57 = vmax.xlane.f32.xlu1 %v56_v22  ;;  %v181_v22 = vadd.s32 4294967272, %v377_v61 }
  0x1c   :  { %54 = vmax.xlane.f32.xlu0 %v53_v23 }
  0x23   :  { %81 = vadd.xlane.f32.xlu2 %v80_v24  ;;  %78 = vadd.xlane.f32.xlu1 %v77_v25 }
  0x24   :  { %75 = vadd.xlane.f32.xlu0 %v74_v26  ;;  %v185_v26 = vadd.s32 4294967264, %v377_v61 }
  0x2b   :  { %90 = vadd.xlane.f32.xlu2 %v89_v27  ;;  %87 = vadd.xlane.f32.xlu1 %v86_v28 }
  0x2c   :  { %84 = vadd.xlane.f32.xlu0 %v83_v29 }
  0x33   :  { %99 = vadd.xlane.f32.xlu2 %v98_v30  ;;  %96 = vadd.xlane.f32.xlu1 %v95_v31 }
  0x34   :  { %93 = vadd.xlane.f32.xlu0 %v92_v32 }
  0x3b   :  { %108 = vadd.xlane.f32.xlu2 %v107_v33  ;;  %105 = vadd.xlane.f32.xlu1 %v104_v34  ;;  %v193_v34 = vadd.s32 4294967248, %v377_v61 }
  0x3c   :  { %102 = vadd.xlane.f32.xlu0 %v101_v35 }
  0x43   :  { %114 = vadd.xlane.f32.xlu1 %v113_v38  ;;  %63 = vmax.xlane.f32.xlu2 %v62_v39 }
  0x44   :  { %111 = vadd.xlane.f32.xlu0 %v110_v40  ;;  %v197_v40 = vadd.s32 4294967240, %v377_v61 }
  0x4b   :  { %66 = vmax.xlane.f32.xlu1 %v65_v43  ;;  %120 = vadd.xlane.f32.xlu2 %v119_v44 }
  0x4c   :  { %117 = vadd.xlane.f32.xlu0 %v116_v45 }
  0x53   :  { %72 = vmax.xlane.f32.xlu1 %v71_v46 }
  0x54   :  { %69 = vmax.xlane.f32.xlu0 %v68_v47 }
  0x76   :  { %v40_v48 = vpop.xlane.xlu2 %39  ;;  %v34_v49 = vpop.xlane.xlu1 %33 }
  0x77   :  { %v28_v50 = vpop.xlane.xlu0 %27 }
  0x7e   :  { %v43_v51 = vpop.xlane.xlu2 %42  ;;  %v37_v52 = vpop.xlane.xlu1 %36 }
  0x7f   :  { %v31_v53 = vpop.xlane.xlu0 %30 }
  0x86   :  { %v369_v54 = vpop.xlane.xlu2 %51  ;;  %v49_v55 = vpop.xlane.xlu1 %48 }
  0x87   :  { %v46_v56 = vpop.xlane.xlu0 %45 }
  0x8e   :  { %v371_v57 = vpop.xlane.xlu2 %60  ;;  %v373_v58 = vpop.xlane.xlu1 %57 }
  0x8f   :  { %v375_v59 = vpop.xlane.xlu0 %54 }
  0x96   :  { %v82_v62 = vpop.xlane.xlu2 %81  ;;  %v79_v63 = vpop.xlane.xlu1 %78 }
  0x97   :  { %v124_v1 = vmul.f32 0.0625, %v82_v62  ;;  %v123_v3 = vmul.f32 0.0625, %v79_v63  ;;  %v76_v4 = vpop.xlane.xlu0 %75  ;;  %v209_v62 = vadd.s32 4294967216, %v377_v61 }
  0x98   :  { %v122_v5 = vmul.f32 0.0625, %v76_v4 }
  0x99   :  { %v140_v6 = vadd.f32 %v124_v1, %v34_v49  ;;  %v139_v7 = vadd.f32 %v123_v3, %v31_v53 }
  0x9a   :  { %v138_v8 = vadd.f32 %v122_v5, %v28_v50 }
  0x9b   :  { %v178_v9 = vperm.slane %v140_v6, %v177_v0  ;;  %v174_v10 = vperm.slane %v139_v7, %v173_v2  ;;  %v213_v7 = vadd.s32 4294967208, %v377_v61 }
  0x9c   :  { %v172_v11 = vperm.slane %v138_v8, %v377_v61  ;;  %v217_v8 = vadd.s32 4294967200, %v377_v61 }
  0x9e   :  { %v176_v12 = vsel %vm175_vm1, %v174_v10, %v172_v11  ;;  %v91_v13 = vpop.xlane.xlu2 %90  ;;  %v88_v14 = vpop.xlane.xlu1 %87 }
  0x9f   :  { %v180_v15 = vsel %vm179_vm2, %v178_v9, %v176_v12  ;;  %v85_v16 = vpop.xlane.xlu0 %84  ;;  %v126_v21 = vmul.f32 0.0625, %v88_v14  ;;  %v127_v30 = vmul.f32 0.0625, %v91_v13 }
  0xa0   :  { %v125_v20 = vmul.f32 0.0625, %v85_v16  ;;  %v229_v16 = vadd.s32 4294967176, %v377_v61 }
  0xa1   :  { %v142_v27 = vadd.f32 %v126_v21, %v40_v48  ;;  %v143_v37 = vadd.f32 %v127_v30, %v43_v51  ;;  %v205_v51 = vadd.s32 4294967224, %v377_v61 }
  0xa2   :  { %v141_v23 = vadd.f32 %v125_v20, %v37_v52  ;;  %v225_v20 = vadd.s32 4294967184, %v377_v61 }
  0xa3   :  { %v186_v33 = vperm.slane %v142_v27, %v185_v26  ;;  %v190_v48 = vperm.slane %v143_v37, %v189_v36 }
  0xa4   :  { %v182_v31 = vperm.slane %v141_v23, %v181_v22 }
  0xa6   :  { %v100_v17 = vpop.xlane.xlu2 %99  ;;  %v97_v18 = vpop.xlane.xlu1 %96  ;;  %v184_v38 = vsel %vm183_vm3, %v182_v31, %v180_v15 }
  0xa7   :  { %v94_v19 = vpop.xlane.xlu0 %93  ;;  %v129_v32 = vmul.f32 0.0625, %v97_v18  ;;  %v188_v44 = vsel %vm187_vm4, %v186_v33, %v184_v38  ;;  %v130_v45 = vmul.f32 0.0625, %v100_v17 }
  0xa8   :  { %v128_v28 = vmul.f32 0.0625, %v94_v19  ;;  %v192_v52 = vsel %vm191_vm5, %v190_v48, %v188_v44 }
  0xa9   :  { %v145_v41 = vadd.f32 %v129_v32, %v49_v55  ;;  %v146_v55 = vadd.f32 %v130_v45, %v369_v54 }
  0xaa   :  { %v144_v35 = vadd.f32 %v128_v28, %v46_v56  ;;  %v201_v56 = vadd.s32 4294967232, %v377_v61 }
  0xab   :  { %v198_v50 = vperm.slane %v145_v41, %v197_v40 }
  0xac   :  { %v194_v46 = vperm.slane %v144_v35, %v193_v34  ;;  %v202_v6 = vperm.slane %v146_v55, %v201_v56 }
  0xae   :  { %v106_v24 = vpop.xlane.xlu1 %105  ;;  %v109_v29 = vpop.xlane.xlu2 %108  ;;  %v196_v60 = vsel %vm195_vm6, %v194_v46, %v192_v52 }
  0xaf   :  { %v103_v25 = vpop.xlane.xlu0 %102  ;;  %v132_v49 = vmul.f32 0.0625, %v106_v24  ;;  %v200_v2 = vsel %vm199_vm7, %v198_v50, %v196_v60  ;;  %v133_v3 = vmul.f32 0.0625, %v109_v29 }
  0xb0   :  { %v131_v42 = vmul.f32 0.0625, %v103_v25  ;;  %v204_v10 = vsel %vm203_vm8, %v202_v6, %v200_v2 }
  0xb1   :  { %v148_v63 = vadd.f32 %v132_v49, %v373_v58  ;;  %v221_v58 = vadd.s32 4294967192, %v377_v61  ;;  %v149_v12 = vadd.f32 %v133_v3, %v371_v57 }
  0xb2   :  { %v147_v53 = vadd.f32 %v131_v42, %v375_v59 }
  0xb3   :  { %v210_v9 = vperm.slane %v148_v63, %v209_v62  ;;  %v214_v22 = vperm.slane %v149_v12, %v213_v7 }
  0xb4   :  { %v206_v4 = vperm.slane %v147_v53, %v205_v51 }
  0xb6   :  { %v115_v39 = vpop.xlane.xlu1 %114  ;;  %v64_v47 = vpop.xlane.xlu2 %63  ;;  %v208_v13 = vsel %vm207_vm9, %v206_v4, %v204_v10 }
  0xb7   :  { %v112_v43 = vpop.xlane.xlu0 %111  ;;  %v135_v54 = vmul.f32 0.0625, %v115_v39  ;;  %v212_v17 = vsel %vm211_vm10, %v210_v9, %v208_v13 }
  0xb8   :  { %v134_v0 = vmul.f32 0.0625, %v112_v43  ;;  %v216_v57 = vsel %vm215_vm11, %v214_v22, %v212_v17 }
  0xba   :  { %v150_v11 = vadd.f32 %v134_v0, %v64_v47 }
  0xbc   :  { %v218_v18 = vperm.slane %v150_v11, %v217_v8 }
  0xbe   :  { %v67_v1 = vpop.xlane.xlu1 %66  ;;  %v121_v59 = vpop.xlane.xlu2 %120  ;;  %v220_v28 = vsel %vm219_vm12, %v218_v18, %v216_v57 }
  0xbf   :  { %v118_v5 = vpop.xlane.xlu0 %117  ;;  %v151_v14 = vadd.f32 %v135_v54, %v67_v1  ;;  %v137_v15 = vmul.f32 0.0625, %v121_v59 }
  0xc0   :  { %v136_v19 = vmul.f32 0.0625, %v118_v5 }
  0xc1   :  { %v222_v23 = vperm.slane %v151_v14, %v221_v58 }
  0xc3   :  { %v224_v61 = vsel %vm223_vm13, %v222_v23, %v220_v28 }
  0xc6   :  { %v73_v21 = vpop.xlane.xlu1 %72 }
  0xc7   :  { %v70_v24 = vpop.xlane.xlu0 %69  ;;  %v153_v25 = vadd.f32 %v137_v15, %v73_v21 }
  0xc8   :  { %v152_v26 = vadd.f32 %v136_v19, %v70_v24 }
  0xc9   :  { %v230_v27 = vperm.slane %v153_v25, %v229_v16 }
  0xca   :  { %v226_v29 = vperm.slane %v152_v26, %v225_v20 }
  0xcc   :  { %v228_v30 = vsel %vm227_vm14, %v226_v29, %v224_v61 }
  0xcd   :  { %v232_v31 = vsel %vm231_vm15, %v230_v27, %v228_v30 }
  0xce   :  { %234 = vst [vmem:[#allocation2] sm:$0x1] %v232_v31 }
  0xcf   :  { %245 = dma.vmem_to_hbm [thread:$0]  %s241_s9, 16, %s243_s12, [#allocation3]  }
  0xd0   :  { %276 = dma.done.wait [#allocation3], 16  }
  0xd1   :  { %277 = vsyncadd [#allocation3], 4294967280 }
  0xd2   :  { %250 = vsyncpa [#allocation3], 1 }

</bundles_post_ra>
